<compile_context>
chip_gen: v6e
topology: v6e:2x2x1
jax: 0.10.0
libtpu: 0.0.40
codegen_flags: <defaults>
</compile_context>

<pallas_src>
import jax
import jax.numpy as jnp
from jax.experimental import pallas as pl
from jax.experimental.pallas import tpu as pltpu

_MIB = 1024 * 1024


def _softmax_kernel(x_ref, o_ref):
    # One (TM, D) tile: full feature axis resident, so the row-reduction is local.
    x = x_ref[...]
    exps = jnp.exp(x.astype(jnp.float32))
    sums = exps.sum(axis=1, keepdims=True)
    # Exact reciprocal keeps 1e-5 accuracy; the kernel is HBM-bound so the extra
    # ALU work is hidden behind the DMA anyway.
    o_ref[...] = (exps * pl.reciprocal(sums, approx=False)).astype(o_ref.dtype)


def _vmem_budgets():
    """Generation-aware (block_budget_bytes, vmem_limit_bytes).

    Measured HBM roofline saturates at ~1-4 MiB tiles, so a smaller budget on v7x
    (64 MiB physical VMEM per TC) costs <1% while removing spill / OOM risk.
    """
    try:
        cap = int(pltpu.get_tpu_info().vmem_capacity_bytes)
    except Exception:
        cap = 64 * _MIB  # conservative default: assume v7x-sized VMEM
    if cap <= 64 * _MIB:                      # v7x
        return 16 * _MIB, min(48 * _MIB, cap - 8 * _MIB)
    return 32 * _MIB, 64 * _MIB               # v5e / v6e (128 MiB physical VMEM)


def _choose_tile_rows(n, d, itemsize, block_budget):
    """Return (rows_per_tile, dma_buffer_count).

    Budgets the double-buffered in/out DMA tiles PLUS the materialized f32
    intermediates (exps temp, and the f32 upcast for sub-32-bit inputs).
    """
    if n <= 8:
        return n, 2  # tiny input: one full block (block dim == array dim is legal)

    f32_temps = 2 if itemsize >= 4 else 3          # exps + result (+ upcast if narrow)
    per_row_pipe = 2 * 2 * d * itemsize            # 2 buffers each for in and out tiles
    per_row_compute = f32_temps * d * 4            # f32 intermediates live in VMEM
    per_row = per_row_pipe + per_row_compute

    budget_rows = (block_budget // per_row) // 8 * 8
    if budget_rows < 8:
        # Huge-D fallback: even an 8-row tile overshoots the budget. Drop to
        # single-buffered DMA tiles (serializes DMA/compute but avoids VMEM OOM
        # on v7x's 64 MiB).
        # TODO(synk): for truly pathological D, split D across a second 'arbitrary'
        # grid axis with a two-pass (sum then normalize) scheme.
        return 8, 1

    # Target >= 8 grid steps (>= 4 per TC on v7x with 'parallel' sharding) so the
    # BlockSpec pipeline has something to prefetch/writeback against; per-step
    # overhead is only ~0.35 us so extra steps are essentially free.
    target_steps = 8
    step_rows = (((n + target_steps - 1) // target_steps) + 7) // 8 * 8
    tm = max(8, min(budget_rows, step_rows))
    return tm, 2


def softmax(x):
    """Pallas softmax over dim=1, matching the PyTorch Softmax.forward semantics."""
    if x.ndim == 1:
        x = x.reshape(1, -1)          # mirrors x.view(1, -1) in the reference
    assert x.ndim == 2, "Softmax expects 1D or 2D input"
    n, d = x.shape

    # Lane-pad the feature axis to a multiple of 128 so the output stores are full
    # (unmasked) vst. Large negative fill => exp -> 0 => row sums unchanged, so the
    # missing max-subtraction doesn't matter for the padded columns either.
    d_pad = max(128, ((d + 127) // 128) * 128)
    if d_pad != d:
        x = jnp.pad(x, ((0, 0), (0, d_pad - d)), constant_values=-1e30)

    block_budget, vmem_limit = _vmem_budgets()
    itemsize = x.dtype.itemsize
    tm, n_buf = _choose_tile_rows(n, d_pad, itemsize, block_budget)
    grid = pl.cdiv(n, tm)             # partial last block is masked automatically

    idx_map = lambda i: (i, 0)
    if n_buf == 2:
        in_spec = pl.BlockSpec((tm, d_pad), idx_map)
        out_spec = pl.BlockSpec((tm, d_pad), idx_map)
    else:
        in_spec = pl.BlockSpec((tm, d_pad), idx_map, pipeline_mode=pl.Buffered(1))
        out_spec = pl.BlockSpec((tm, d_pad), idx_map, pipeline_mode=pl.Buffered(1))

    # Advisory cost hint so XLA schedules neighbors around this mem-bound call well.
    cost = pl.CostEstimate(
        flops=4 * n * d_pad,
        transcendentals=n * d_pad,
        bytes_accessed=2 * n * d_pad * itemsize,
    )

    out = pl.pallas_call(
        _softmax_kernel,
        out_shape=jax.ShapeDtypeStruct((n, d_pad), x.dtype),
        grid_spec=pltpu.PrefetchScalarGridSpec(
            num_scalar_prefetch=0,
            grid=(grid,),
            in_specs=[in_spec],
            out_specs=out_spec,
        ),
        compiler_params=pltpu.CompilerParams(
            dimension_semantics=("parallel",),
            vmem_limit_bytes=int(vmem_limit),
        ),
        cost_estimate=cost,
    )(x)

    if d_pad != d:
        out = out[:, :d]
    return out


def softmax_ref(x):
    if x.ndim == 1:
        x = x.reshape(1, -1)
    exps = jnp.exp(x)
    return exps / exps.sum(axis=1, keepdims=True)


if __name__ == "__main__":
    key = jax.random.PRNGKey(0)

    # Small 2D input consistent with the module's (batch, features) usage.
    x = jax.random.normal(key, (16, 256), dtype=jnp.float32)
    out = softmax(x)
    jax.block_until_ready(out)
    assert out.shape == x.shape
    assert jnp.allclose(out, softmax_ref(x), atol=1e-5, rtol=1e-5), "mismatch vs reference"

    # N not divisible by the row tile: exercises the cdiv grid + masked last block.
    x2 = jax.random.normal(jax.random.PRNGKey(2), (13, 256), dtype=jnp.float32)
    out2 = softmax(x2)
    jax.block_until_ready(out2)
    assert out2.shape == x2.shape
    assert jnp.allclose(out2, softmax_ref(x2), atol=1e-5, rtol=1e-5), "mismatch (partial block)"

    # D not a multiple of 128: exercises the lane-padding path (pad -> exp 0 -> slice back).
    x3 = jax.random.normal(jax.random.PRNGKey(3), (16, 200), dtype=jnp.float32)
    out3 = softmax(x3)
    jax.block_until_ready(out3)
    assert out3.shape == x3.shape
    assert jnp.allclose(out3, softmax_ref(x3), atol=1e-5, rtol=1e-5), "mismatch (lane padding)"

    # 1D path (reference reshapes 1D -> (1, -1)).
    x1 = jax.random.normal(jax.random.PRNGKey(1), (128,), dtype=jnp.float32)
    out1 = softmax(x1)
    jax.block_until_ready(out1)
    assert out1.shape == (1, 128)
    assert jnp.allclose(out1, softmax_ref(x1), atol=1e-5, rtol=1e-5), "mismatch (1D path)"

    print("KERNEL_OK")
</pallas_src>

<mosaic_0001>
module attributes {stable_mosaic.version = 11 : i64} {
  func.func @_softmax_kernel(%arg0: i32, %arg1: memref<8x256xf32, #tpu.memory_space<vmem>>, %arg2: memref<8x256xf32, #tpu.memory_space<vmem>>) attributes {dimension_semantics = [#tpu.dimension_semantics<parallel>], iteration_bounds = array<i64: 2>, scalar_prefetch = 0 : i64, scratch_operands = 0 : i64, tpu.core_type = #tpu.core_type<tc>, window_params = [{transform_indices = @transform_0, window_bounds = array<i64: 8, 256>}, {transform_indices = @transform_1, window_bounds = array<i64: 8, 256>}]} {
    %c0 = arith.constant 0 : index
    %c0_0 = arith.constant 0 : index
    %0 = vector.load %arg1[%c0, %c0_0] : memref<8x256xf32, #tpu.memory_space<vmem>>, vector<8x256xf32>
    %1 = math.exp %0 : vector<8x256xf32>
    %cst = arith.constant dense<0.000000e+00> : vector<8xf32>
    %2 = vector.multi_reduction <add>, %1, %cst [1] : vector<8x256xf32> to vector<8xf32>
    %3 = vector.shape_cast %2 : vector<8xf32> to vector<8x1xf32>
    %4 = tpu.reciprocal %3 : vector<8x1xf32> -> vector<8x1xf32>
    %5 = vector.broadcast %4 : vector<8x1xf32> to vector<8x256xf32>
    %6 = arith.mulf %1, %5 : vector<8x256xf32>
    %c0_1 = arith.constant 0 : index
    %c0_2 = arith.constant 0 : index
    %7 = vector.load %arg2[%c0_1, %c0_2] : memref<8x256xf32, #tpu.memory_space<vmem>>, vector<8x256xf32>
    tpu.vector_store %arg2[%c0_1, %c0_2], %6 {strides = array<i32>} : memref<8x256xf32, #tpu.memory_space<vmem>>, vector<8x256xf32>,
    return
  }
  func.func @transform_0(%arg0: i32) -> (i32, i32) {
    %c0_i32 = arith.constant 0 : i32
    %c0_i32_0 = arith.constant 0 : i32
    return %arg0, %c0_i32 : i32, i32
  }
  func.func @transform_1(%arg0: i32) -> (i32, i32) {
    %c0_i32 = arith.constant 0 : i32
    %c0_i32_0 = arith.constant 0 : i32
    return %arg0, %c0_i32 : i32, i32
  }
}

</mosaic_0001>

<bundles_post_ra>
// kernel: tpu_custom_call.1
= control target key start
LH: loop header
LB: loop body
LE: loop exit
PB: predicated region body
PF: predicated region fallthrough
CT: control target
= control target key end

     0   :  { %6 = vsyncpa [#allocation3], 0  ;;  %s553_s0 = inlined_call_operand.hbm [shape: f32[16,256], index: 0, kind: input, shape index: {}]   ;;  %s554_s1 = inlined_call_operand.hbm [shape: f32[16,256], index: 1, kind: output, shape index: {}]  }
   0x1   :  { %8 = vsyncpa [#allocation3 + $0x1], 0 }
   0x2   :  { %9 = vsyncpa [#allocation4], 0 }
   0x3   :  { %11 = vsyncpa [#allocation4 + $0x1], 0  ;;  %s406_s6 = smov 0   ;;  %s408_s7 = smov 0  }
   0x4   :  { %s410_s8 = smov 0   ;;  %s412_s9 = smov 0  }
   0x5 LB: > { %s427_s10 = sadd.s32 4294967295, %s392_s9   ;;  %s232_s11 = sadd.s32 4294967294, %s392_s9   ;;  %s392_s9 = sphi %s412_s9, %s571_s9   ;;  %s388_s8 = sphi %s410_s8, %s570_s8   ;;  %s384_s7 = sphi %s408_s7, %s569_s7   ;;  %s380_s6 = sphi %s406_s6, %s568_s6  }
   0x6   : > { %s431_s12 = sadd.s32 1, %s392_s9   ;;  %s24_s13 = sadd.s32 1, %s388_s8 }
   0x7   : > { %s21_s14 = ssub.s32 %s392_s9, %s431_s12  ;;  %p31_p0 = scmp.ne.s32.totalorder %s388_s8, %s384_s7 }
   0x8   : > { %p22_p1 = scmp.eq.s32.totalorder %s21_s14, 0  ;;  %p32_p2 = scmp.eq.s32.totalorder %s392_s9, 0 }
   0x9   : > { %p37_p3 = scmp.ne.s32.totalorder %s384_s7, %s380_s6  ;;  %p38_p4 = scmp.eq.s32.totalorder %s427_s10, 0 }
   0xa   : > { %s443_s15 = scalar_select %p22_p1, %s388_s8, %s24_s13  }
   0xb   : > { %p445_p5 = por %p32_p2, %p31_p0  ;;  %p449_p6 = por %p38_p4, %p37_p3 }
   0xc   : > { %p61_p7 = scmp.eq.s32.totalorder %s427_s10, 1  ;;  %p67_p8 = scmp.eq.s32.totalorder %s232_s11, 1 }
   0xd   : > { %s558_s17 = scalar_select %p449_p6, 1, 0 }
   0xe   : > { %p260_p10 = scmp.lt.s32.totalorder %s392_s9, 2  ;;  %p456_p11 = por %p61_p7, %p31_p0 }
   0xf   : > { %p460_p12 = por %p67_p8, %p37_p3  ;;  %s87_s20 = sand.u32 1, %s388_s8  }
  0x10   : > { %s559_s18 = scalar_select %p456_p11, 1, 0 }
  0x11   : > { %s560_s19 = scalar_select %p460_p12, 1, 0 }
  0x12   : > { %s246_s21 = sshll.u32 %s392_s9, 8  ;;  %s235_s22 = sshll.u32 %s87_s20, 4 }
  0x13   : > { %s469_s25 = scalar_lea.hbm %s553_s0, %s246_s21  ;;  %s91_s26 = scalar_lea.vmem [#allocation2], %s235_s22 }
  0x14   : > { %s99_s27 = sshll.u32 %s91_s26, 4  ;;  %p473_p13 = pnand %p260_p10, %p445_p5  ;;  %s477_s27 = int_to_ptr.vmem [resolvable:$true] %s99_s27 }
  0x15   : > { %s88_s29 = scalar_lea.sflag [#allocation3], %s87_s20  ;;  %s300_s30 = scalar_lea.hbm %s469_s25, 256 }
  0x16   : > { %p301_p2 = scmp.ne.s32.totalorder %s469_s25, %s300_s30  ;;  %p302_p3 = pneg %p473_p13 }
  0x17   : > { %s305_s4 = scalar_lea.hbm %s553_s0, 512  ;;  %p306_p5 = scmp.lt.s32.totalorder %s469_s25, %s553_s0 }
  0x18   : > { %p303_p4 = pnand %p302_p3, %p301_p2  ;;  %p307_p8 = scmp.lt.s32.totalorder %s305_s4, %s300_s30 }
  0x1a   : > { %p304_p7 = pneg %p303_p4  ;;  %p308_p10 = por %p307_p8, %p306_p5 }
  0x1c   : > { %p309_p9 = pnand %p308_p10, %p304_p7 }
  0x1e   : > { %312 = shalt.err (!%p309_p9)
}
  0x1f   : > { %s313_s13 = scalar_lea.vmem %s477_s27, 256  ;;  %s394_s14 = smov [#allocation2]  }
  0x20   : > { %p314_p0 = scmp.ne.s32.totalorder %s477_s27, %s313_s13  ;;  %s318_s16 = sshll.u32 %s394_s14, 4  ;;  %s319_s16 = int_to_ptr.vmem [resolvable:$false] %s318_s16 }
  0x21   : > { %s320_s20 = scalar_lea.vmem %s319_s16, 512  ;;  %p321_p4 = scmp.lt.s32.totalorder %s477_s27, %s319_s16 }
  0x22   : > { %p316_p1 = pnand %p314_p0, %p302_p3  ;;  %p322_p12 = scmp.lt.s32.totalorder %s320_s20, %s313_s13 }
  0x24   : > { %p317_p2 = pneg %p316_p1  ;;  %p323_p11 = por %p322_p12, %p321_p4 }
  0x26   : > { %p324_p6 = pnand %p323_p11, %p317_p2 }
  0x28   : > { %327 = shalt.err (!%p324_p6)
}
  0x29   : > { %255 = dma.hbm_to_vmem [thread:$0]  (!%p473_p13), %s469_s25, 256, %s477_s27, %s88_s29  }
  0x2a   : > { %p562_p9 = scmp.lt.s32.totalorder %s392_s9, 3  ;;  %p563_p7 = scmp.ge.s32.totalorder %s392_s9, 1 }
  0x2c   : > { %p105_p0 = pnand %p563_p7, %p562_p9 }
  0x2d   : > { %s504_s21 = sand.u32 (!%p105_p0), 1, %s384_s7   ;;  %p564_p6 = scmp.ne.s32.totalorder (!%p105_p0), %s558_s17, 0 }
  0x2e   : > { %108 = sbr.rel (%p105_p0) target bundleno = 239 (0xef), region = 24  ;;  %s239_s22 = sshll.u32 (!%p105_p0), %s504_s21, 4 }
  0x2f   : > { %s111_s23 = scalar_lea.sflag (!%p105_p0), [#allocation3], %s504_s21  ;;  %s114_s24 = scalar_lea.vmem (!%p105_p0), [#allocation2], %s239_s22 }
  0x33   : > { %371 = dma.done.wait (%p564_p6), %s111_s23, 256  }
  0x34   : > { %373 = vsyncadd (%p564_p6), %s111_s23, 4294967040  ;;  %v133_v0 = vld [vmem:[%s114_s24] sm:$0xff]  ;;  %v134_v1 = vld [vmem:[%s114_s24 + $0x8] sm:$0xff]  ;;  %s247_s25 = sshll.u32 %s427_s10, 8  ;;  %s132_s26 = scalar_lea.vmem [#allocation5], %s239_s22 }
  0x35   : > { %v135_v2 = vmul.f32 1.442695, %v133_v0  ;;  %v137_v3 = vmul.f32 1.442695, %v134_v1  ;;  %s162_s27 = sshll.u32 %s132_s26, 4  ;;  %s516_s29 = scalar_lea.hbm %s554_s1, %s247_s25  ;;  %s163_s27 = int_to_ptr.vmem [resolvable:$true] %s162_s27 }
  0x36   : > { %s148_s30 = scalar_lea.sflag [#allocation4], %s504_s21  ;;  %s328_s2 = scalar_lea.vmem %s163_s27, 256 }
  0x37   : > { %294 = vpow2.f32 %v135_v2  ;;  %p329_p11 = scmp.ne.s32.totalorder %s163_s27, %s328_s2  ;;  %p565_p12 = scmp.ne.s32.totalorder %s559_s18, 0 }
  0x38   : > { %296 = vpow2.f32 %v137_v3  ;;  %s395_s10 = smov [#allocation5]  }
  0x39   : > { %p330_p13 = pnand %p329_p11, %p565_p12  ;;  %s332_s3 = sshll.u32 %s395_s10, 4  ;;  %s333_s3 = int_to_ptr.vmem [resolvable:$false] %s332_s3 }
  0x3a   : > { %s334_s4 = scalar_lea.vmem %s333_s3, 512  ;;  %p335_p3 = scmp.lt.s32.totalorder %s163_s27, %s333_s3 }
  0x3b   : > { %p331_p1 = pneg %p330_p13  ;;  %p336_p5 = scmp.lt.s32.totalorder %s334_s4, %s328_s2 }
  0x3d   : > { %p337_p8 = por %p336_p5, %p335_p3 }
  0x3f   : > { %p338_p10 = pnand %p337_p8, %p331_p1 }
  0x44   : > { %v295_v4 = vpop.eup %294 }
  0x45   : > { %v297_v5 = vpop.eup %296 }
  0x46   : > { %v139_v6 = vadd.f32 %v297_v5, %v295_v4 }
  0x48   : > { %140 = vadd.xlane.f32.xlu0 %v139_v6 }
  0xd1   : > { %v141_v7 = vpop.xlane.xlu0 %140 }
  0xd2   : > { %298 = vrcp.f32 %v141_v7 }
  0xdf   : > { %v299_v8 = vpop.eup %298 }
  0xe0   : > { %v143_v9 = vmul.f32 %v299_v8, %v295_v4  ;;  %v144_v10 = vmul.f32 %v299_v8, %v297_v5 }
  0xe2   : > { %145 = vst [vmem:[%s132_s26] sm:$0xff] %v143_v9  ;;  %146 = vst [vmem:[%s132_s26 + $0x8] sm:$0xff] %v144_v10 }
  0xe3   : > { %341 = shalt.err (!%p338_p10)
}
  0xe4   : > { %s342_s5 = scalar_lea.hbm %s516_s29, 256  ;;  %s346_s14 = scalar_lea.hbm %s554_s1, 512 }
  0xe5   : > { %p343_p2 = scmp.ne.s32.totalorder %s516_s29, %s342_s5  ;;  %p347_p7 = scmp.lt.s32.totalorder %s516_s29, %s554_s1 }
  0xe6   : > { %p348_p0 = scmp.lt.s32.totalorder %s346_s14, %s342_s5 }
  0xe7   : > { %p344_p4 = pnand %p343_p2, %p565_p12 }
  0xe8   : > { %p349_p6 = por %p348_p0, %p347_p7 }
  0xe9   : > { %p345_p9 = pneg %p344_p4 }
  0xeb   : > { %p350_p11 = pnand %p349_p6, %p345_p9 }
  0xed   : > { %353 = shalt.err (!%p350_p11)
}
  0xee   : > { %250 = dma.vmem_to_hbm [thread:$0]  (%p565_p12), %s163_s27, 256, %s516_s29, %s148_s30  }
  0xef PF: > { %s174_s21 = sand.u32 1, %s380_s6   ;;  %p566_p13 = scmp.ne.s32.totalorder %s560_s19, 0 }
  0xf0   : > { %p567_p1 = scmp.ge.s32.totalorder %s392_s9, 2  ;;  %s175_s22 = scalar_lea.sflag [#allocation4], %s174_s21 }
  0xf2   : > { %p257_p3 = pnand %p567_p1, %p566_p13 }
  0xf4   : > { %p258_p5 = pneg %p257_p3 }
  0xf6   : > { %375 = dma.done.wait (%p258_p5), %s175_s22, 256  }
  0xf7   : > { %377 = vsyncadd (%p258_p5), %s175_s22, 4294967040  ;;  %p14_p8 = scmp.ge.s32.totalorder %s431_s12, 4   ;;  %s568_s6 = smov %s384_s7 }
  0xf8   : > { %s569_s7 = smov %s388_s8  ;;  %s570_s8 = smov %s443_s15 }
  0xf9   : > { %s571_s9 = smov %s431_s12  ;;  %16 = sbr.rel (!%p14_p8) target bundleno = 5 (0x5), region = 69 }
  0xfe   :  { %180 = vsyncpa [#allocation3], 1 }
  0xff   :  { %182 = vsyncpa [#allocation3 + $0x1], 1 }
 0x100   :  { %183 = vsyncpa [#allocation4], 1 }
 0x101   :  { %185 = vsyncpa [#allocation4 + $0x1], 1 }

</bundles_post_ra>
